<compile_context>
chip_gen: v7x
topology: tpu7x:2x2x1
jax: 0.10.0
libtpu: 0.0.40
codegen_flags: <defaults>
</compile_context>

<pallas_src>
import functools

import numpy as np
import jax
import jax.numpy as jnp
from jax import lax
from jax.experimental import pallas as pl
from jax.experimental.pallas import tpu as pltpu

NEG_SLOPE = 0.01          # torch.nn.LeakyReLU default negative_slope
LANES = 128               # input / output lane width
NLANES = 256              # slab lane width (144 pooled features need > 128 lanes)

IN_CH, IN_H, IN_W = 4, 5, 5
IN_FEAT = IN_CH * IN_H * IN_W          # 100 raw input floats per sample
BIAS_LANE = IN_FEAT                    # lane 100 holds the constant 1.0
KSIZE = 2
N_FILTERS = 16
CONV_HW = IN_H - KSIZE + 1             # 4  (conv output spatial size)
POOL_HW = CONV_HW - KSIZE + 1          # 3  (pooled output spatial size)
POOL_P = POOL_HW * POOL_HW             # 9
FLAT = N_FILTERS * POOL_P              # 144 = flattened pooled features

# packed parameter slab row offsets (all multiples of 8 -> tile-aligned slices)
OFF_WC = 0                             # 4 x 128 rows: conv(+BN,+bias) weight per pool offset
OFF_W1 = OFF_WC + 4 * LANES            # 512: 256 rows, Linear(144, hidden) as w1.T
OFF_W2 = OFF_W1 + NLANES               # 768: 256 rows, Linear(hidden, action_dim) as w2.T
OFF_B1 = OFF_W2 + NLANES               # 1024: 8 rows, row 0 = b1
OFF_B2 = OFF_B1 + 8                    # 1032: 8 rows, row 0 = b2
TOTAL_ROWS = OFF_B2 + 8                # 1040

BB_MIN = 8                             # sublane alignment of the per-step chunk
BB_MAX = 256                           # cap (amortizes overhead, tiny in VMEM)


def actor_kernel(x_ref, slab_ref, out_ref):
    x = x_ref[...]                                                     # (bb, 128)

    # Conv2d + folded eval-mode BatchNorm + conv bias, evaluated at each of the
    # four 2x2 max-pool window offsets; the im2col gather is folded into the
    # constant weight blocks, and the bias enters through the constant-1 lane.
    # TODO(synk): BatchNorm2d uses running stats (eval mode); training-mode batch
    # statistics are not reproduced.
    a0 = jnp.dot(x, slab_ref[OFF_WC + 0 * LANES:OFF_WC + 1 * LANES, :],
                 preferred_element_type=jnp.float32)                   # (bb, 256)
    a1 = jnp.dot(x, slab_ref[OFF_WC + 1 * LANES:OFF_WC + 2 * LANES, :],
                 preferred_element_type=jnp.float32)
    a2 = jnp.dot(x, slab_ref[OFF_WC + 2 * LANES:OFF_WC + 3 * LANES, :],
                 preferred_element_type=jnp.float32)
    a3 = jnp.dot(x, slab_ref[OFF_WC + 3 * LANES:OFF_WC + 4 * LANES, :],
                 preferred_element_type=jnp.float32)

    # MaxPool2d(2, stride=1) == elementwise max over the 4 offsets.
    # LeakyReLU is monotone increasing, so it commutes with the max (applied once).
    m = jnp.maximum(jnp.maximum(a0, a1), jnp.maximum(a2, a3))          # (bb, 256)
    m = jnp.where(m > 0, m, NEG_SLOPE * m)                             # lanes >=144 stay 0

    # Linear(144, hidden) + ReLU
    h = jnp.dot(m, slab_ref[OFF_W1:OFF_W1 + NLANES, :],
                preferred_element_type=jnp.float32)                    # (bb, 256)
    h = jnp.maximum(h + slab_ref[OFF_B1:OFF_B1 + 1, :], 0.0)

    # Linear(hidden, action_dim); lanes >= action_dim stay zero (+ zero bias pad).
    o = jnp.dot(h, slab_ref[OFF_W2:OFF_W2 + NLANES, 0:LANES],
                preferred_element_type=jnp.float32)                    # (bb, 128)
    out_ref[...] = o + slab_ref[OFF_B2:OFF_B2 + 1, 0:LANES]


def prepare_params(params):
    """One-time host-side packing of all parameters into a single VMEM slab."""
    (wconv, bconv, gamma, beta, rmean, rvar, w1, b1, w2, b2) = (
        np.asarray(p, np.float32) for p in params)
    n_filters, cin, ksz = wconv.shape[0], wconv.shape[1], wconv.shape[2]
    hidden = w1.shape[0]
    action_dim = w2.shape[0]
    assert (n_filters, cin, ksz) == (N_FILTERS, IN_CH, KSIZE)
    assert w1.shape[1] == FLAT
    assert hidden <= LANES and action_dim <= LANES
    assert IN_FEAT + 1 <= LANES and FLAT + 1 <= NLANES

    eps = 1e-5
    scale = gamma / np.sqrt(rvar + eps)            # fold BN (eval mode) into conv
    shift = beta - rmean * scale
    wfold = wconv * scale[:, None, None, None]
    bfold = bconv * scale + shift

    slab = np.zeros((TOTAL_ROWS, NLANES), np.float32)

    # Conv weight blocks: for pool-window offset (oi, oj) and pooled position
    # (pi, pj), out_lane = oc*9 + pi*3 + pj holds the conv(+BN) output at
    # conv position (pi+oi, pj+oj). Bias goes through the constant-1 input lane.
    for o, (oi, oj) in enumerate(((0, 0), (0, 1), (1, 0), (1, 1))):
        base = OFF_WC + o * LANES
        for oc in range(n_filters):
            for pi in range(POOL_HW):
                for pj in range(POOL_HW):
                    out_lane = oc * POOL_P + pi * POOL_HW + pj
                    slab[base + BIAS_LANE, out_lane] = bfold[oc]
                    for ci in range(cin):
                        for kh in range(ksz):
                            for kw in range(ksz):
                                in_lane = (ci * IN_H + pi + oi + kh) * IN_W + (pj + oj + kw)
                                slab[base + in_lane, out_lane] = wfold[oc, ci, kh, kw]

    # MLP weights / biases (pooled-feature lane order == PyTorch flatten order).
    slab[OFF_W1:OFF_W1 + FLAT, :hidden] = w1.T
    slab[OFF_W2:OFF_W2 + hidden, :action_dim] = w2.T
    slab[OFF_B1, :hidden] = b1
    slab[OFF_B2, :action_dim] = b2

    return {"slab": jnp.asarray(slab), "action_dim": int(action_dim)}


def _choose_chunk(batch):
    """Samples per grid step: big enough to amortize per-step overhead, but keep
    >= 2 chunks for modest batches so both v7x TensorCores get work."""
    if batch <= BB_MIN:
        return BB_MIN
    half = -(-batch // 2)
    bb = -(-half // BB_MIN) * BB_MIN
    return min(BB_MAX, bb)


@functools.partial(jax.jit, static_argnames=("action_dim",))
def _forward_batched(x, slab, action_dim):
    """x: (B, 4, 5, 5). Returns (B, action_dim); row b == Actor.forward(x[b:b+1])."""
    batch = x.shape[0]
    bb = _choose_chunk(batch)
    nc = -(-batch // bb)
    bp = nc * bb

    # One 128-lane row per sample: raw (c,h,w)-flattened input + constant-1 bias lane.
    xf = x.astype(jnp.float32).reshape(batch, IN_FEAT)
    rows = jnp.concatenate([xf, jnp.ones((batch, 1), jnp.float32)], axis=1)
    rows = jnp.pad(rows, ((0, bp - batch), (0, LANES - IN_FEAT - 1)))   # (bp, 128)

    out = pl.pallas_call(
        actor_kernel,
        out_shape=jax.ShapeDtypeStruct((bp, LANES), jnp.float32),
        grid_spec=pltpu.PrefetchScalarGridSpec(
            num_scalar_prefetch=0,
            grid=(nc,),
            in_specs=[
                pl.BlockSpec((bb, LANES), lambda i: (i, 0)),
                pl.BlockSpec((TOTAL_ROWS, NLANES), lambda i: (0, 0)),
            ],
            out_specs=pl.BlockSpec((bb, LANES), lambda i: (i, 0)),
        ),
        compiler_params=pltpu.CompilerParams(dimension_semantics=("parallel",)),
    )(rows, slab)
    return out[:batch, :action_dim]


def actor_forward_batch(x, prepared):
    return _forward_batched(x, prepared["slab"], action_dim=prepared["action_dim"])


def actor_forward(x, prepared):
    """x: (1, 4, 5, 5) exactly like the PyTorch module. Returns (action_dim,)."""
    return _forward_batched(x, prepared["slab"], action_dim=prepared["action_dim"])[0]


def actor_reference(x, params):
    """Pure-JAX reference matching the PyTorch forward (eval-mode BN), batched."""
    wconv, bconv, gamma, beta, rmean, rvar, w1, b1, w2, b2 = params
    a = lax.conv_general_dilated(x.astype(jnp.float32), wconv, (1, 1), 'VALID',
                                 dimension_numbers=('NCHW', 'OIHW', 'NCHW'))
    a = a + bconv.reshape(1, -1, 1, 1)
    eps = 1e-5
    a = (a - rmean.reshape(1, -1, 1, 1)) / jnp.sqrt(rvar.reshape(1, -1, 1, 1) + eps)
    a = a * gamma.reshape(1, -1, 1, 1) + beta.reshape(1, -1, 1, 1)
    a = jnp.where(a > 0, a, NEG_SLOPE * a)
    a = lax.reduce_window(a, -jnp.inf, lax.max, (1, 1, 2, 2), (1, 1, 1, 1), 'VALID')
    flat = a.reshape(a.shape[0], -1)                  # PyTorch flatten order (c,h,w)
    h = jnp.maximum(flat @ w1.T + b1, 0.0)
    return h @ w2.T + b2


if __name__ == "__main__":
    key = jax.random.PRNGKey(0)
    ks = jax.random.split(key, 11)

    C, Hs, Ws = 4, 5, 5            # 5x5 input so conv(2)+pool(2) -> 3x3 = 16*3*3 flat
    n_filters, K = 16, 2
    hidden, action_dim = 5, 4      # hidden_dim=5 (module default)
    B = 16                         # batch of independent states (vmapped module forward)

    x = jax.random.normal(ks[0], (B, C, Hs, Ws), jnp.float32)

    wconv = 0.1 * jax.random.normal(ks[1], (n_filters, C, K, K), jnp.float32)
    bconv = 0.1 * jax.random.normal(ks[2], (n_filters,), jnp.float32)
    gamma = 1.0 + 0.1 * jax.random.normal(ks[3], (n_filters,), jnp.float32)
    beta = 0.1 * jax.random.normal(ks[4], (n_filters,), jnp.float32)
    rmean = 0.1 * jax.random.normal(ks[5], (n_filters,), jnp.float32)
    rvar = 1.0 + 0.1 * jax.random.uniform(ks[6], (n_filters,), jnp.float32)
    w1 = 0.1 * jax.random.normal(ks[7], (hidden, n_filters * 3 * 3), jnp.float32)
    b1 = 0.1 * jax.random.normal(ks[8], (hidden,), jnp.float32)
    w2 = 0.1 * jax.random.normal(ks[9], (action_dim, hidden), jnp.float32)
    b2 = 0.1 * jax.random.normal(ks[10], (action_dim,), jnp.float32)

    params = (wconv, bconv, gamma, beta, rmean, rvar, w1, b1, w2, b2)
    prepared = prepare_params(params)          # one-time host-side packing

    out = jax.block_until_ready(actor_forward_batch(x, prepared))     # (B, action_dim)
    ref = jax.block_until_ready(actor_reference(x, params))
    np.testing.assert_allclose(np.asarray(out), np.asarray(ref), rtol=1e-4, atol=1e-4)

    # single-state call, exactly like Actor.forward on a (1,4,5,5) input
    single = jax.block_until_ready(actor_forward(x[:1], prepared))
    np.testing.assert_allclose(np.asarray(single), np.asarray(ref[0]),
                               rtol=1e-4, atol=1e-4)

    # larger batch exercises the 256-samples-per-step path (2 chunks of 256)
    xb = jax.random.normal(jax.random.PRNGKey(1), (512, C, Hs, Ws), jnp.float32)
    outb = jax.block_until_ready(actor_forward_batch(xb, prepared))
    refb = jax.block_until_ready(actor_reference(xb, params))
    np.testing.assert_allclose(np.asarray(outb), np.asarray(refb), rtol=1e-4, atol=1e-4)

    print("KERNEL_OK")
</pallas_src>

<mosaic_0001>
module attributes {stable_mosaic.version = 11 : i64} {
  func.func @actor_kernel(%arg0: i32, %arg1: memref<8x128xf32, #tpu.memory_space<vmem>>, %arg2: memref<1040x256xf32, #tpu.memory_space<vmem>>, %arg3: memref<8x128xf32, #tpu.memory_space<vmem>>) attributes {dimension_semantics = [#tpu.dimension_semantics<parallel>], iteration_bounds = array<i64: 2>, scalar_prefetch = 0 : i64, scratch_operands = 0 : i64, tpu.core_type = #tpu.core_type<tc>, window_params = [{transform_indices = @transform_0, window_bounds = array<i64: 8, 128>}, {pipeline_mode = #tpu.pipeline_mode<synchronous>, transform_indices = @transform_1, window_bounds = array<i64: 1040, 256>}, {transform_indices = @transform_2, window_bounds = array<i64: 8, 128>}]} {
    %c0 = arith.constant 0 : index
    %c0_0 = arith.constant 0 : index
    %0 = vector.load %arg1[%c0, %c0_0] : memref<8x128xf32, #tpu.memory_space<vmem>>, vector<8x128xf32>
    %c0_1 = arith.constant 0 : index
    %c0_2 = arith.constant 0 : index
    %1 = vector.load %arg2[%c0_1, %c0_2] : memref<1040x256xf32, #tpu.memory_space<vmem>>, vector<128x256xf32>
    %cst = arith.constant dense<0.000000e+00> : vector<8x256xf32>
    %2 = tpu.matmul %0, %1, %cst {dimension_numbers = #tpu.dot_dimension_numbers<[1], [0], [0], [1], [0, 0, 1, 1], [], []>} : vector<8x128xf32>, vector<128x256xf32>, vector<8x256xf32> -> vector<8x256xf32>
    %c128 = arith.constant 128 : index
    %c0_3 = arith.constant 0 : index
    %3 = vector.load %arg2[%c128, %c0_3] : memref<1040x256xf32, #tpu.memory_space<vmem>>, vector<128x256xf32>
    %cst_4 = arith.constant dense<0.000000e+00> : vector<8x256xf32>
    %4 = tpu.matmul %0, %3, %cst_4 {dimension_numbers = #tpu.dot_dimension_numbers<[1], [0], [0], [1], [0, 0, 1, 1], [], []>} : vector<8x128xf32>, vector<128x256xf32>, vector<8x256xf32> -> vector<8x256xf32>
    %c256 = arith.constant 256 : index
    %c0_5 = arith.constant 0 : index
    %5 = vector.load %arg2[%c256, %c0_5] : memref<1040x256xf32, #tpu.memory_space<vmem>>, vector<128x256xf32>
    %cst_6 = arith.constant dense<0.000000e+00> : vector<8x256xf32>
    %6 = tpu.matmul %0, %5, %cst_6 {dimension_numbers = #tpu.dot_dimension_numbers<[1], [0], [0], [1], [0, 0, 1, 1], [], []>} : vector<8x128xf32>, vector<128x256xf32>, vector<8x256xf32> -> vector<8x256xf32>
    %c384 = arith.constant 384 : index
    %c0_7 = arith.constant 0 : index
    %7 = vector.load %arg2[%c384, %c0_7] : memref<1040x256xf32, #tpu.memory_space<vmem>>, vector<128x256xf32>
    %cst_8 = arith.constant dense<0.000000e+00> : vector<8x256xf32>
    %8 = tpu.matmul %0, %7, %cst_8 {dimension_numbers = #tpu.dot_dimension_numbers<[1], [0], [0], [1], [0, 0, 1, 1], [], []>} : vector<8x128xf32>, vector<128x256xf32>, vector<8x256xf32> -> vector<8x256xf32>
    %9 = arith.maximumf %2, %4 : vector<8x256xf32>
    %10 = arith.maximumf %6, %8 : vector<8x256xf32>
    %11 = arith.maximumf %9, %10 : vector<8x256xf32>
    %cst_9 = arith.constant 0.000000e+00 : f32
    %12 = vector.broadcast %cst_9 : f32 to vector<8x256xf32>
    %13 = arith.cmpf ogt, %11, %12 : vector<8x256xf32>
    %cst_10 = arith.constant 0.00999999977 : f32
    %14 = vector.broadcast %cst_10 : f32 to vector<8x256xf32>
    %15 = arith.mulf %14, %11 : vector<8x256xf32>
    %16 = arith.select %13, %11, %15 : vector<8x256xi1>, vector<8x256xf32>
    %c512 = arith.constant 512 : index
    %c0_11 = arith.constant 0 : index
    %17 = vector.load %arg2[%c512, %c0_11] : memref<1040x256xf32, #tpu.memory_space<vmem>>, vector<256x256xf32>
    %cst_12 = arith.constant dense<0.000000e+00> : vector<8x256xf32>
    %18 = tpu.matmul %16, %17, %cst_12 {dimension_numbers = #tpu.dot_dimension_numbers<[1], [0], [0], [1], [0, 0, 1, 1], [], []>} : vector<8x256xf32>, vector<256x256xf32>, vector<8x256xf32> -> vector<8x256xf32>
    %c1024 = arith.constant 1024 : index
    %c0_13 = arith.constant 0 : index
    %19 = vector.load %arg2[%c1024, %c0_13] : memref<1040x256xf32, #tpu.memory_space<vmem>>, vector<1x256xf32>
    %20 = vector.broadcast %19 : vector<1x256xf32> to vector<8x256xf32>
    %21 = arith.addf %18, %20 : vector<8x256xf32>
    %cst_14 = arith.constant 0.000000e+00 : f32
    %22 = vector.broadcast %cst_14 : f32 to vector<8x256xf32>
    %23 = arith.maximumf %21, %22 : vector<8x256xf32>
    %c768 = arith.constant 768 : index
    %c0_15 = arith.constant 0 : index
    %24 = vector.load %arg2[%c768, %c0_15] : memref<1040x256xf32, #tpu.memory_space<vmem>>, vector<256x128xf32>
    %cst_16 = arith.constant dense<0.000000e+00> : vector<8x128xf32>
    %25 = tpu.matmul %23, %24, %cst_16 {dimension_numbers = #tpu.dot_dimension_numbers<[1], [0], [0], [1], [0, 0, 1, 1], [], []>} : vector<8x256xf32>, vector<256x128xf32>, vector<8x128xf32> -> vector<8x128xf32>
    %c1032 = arith.constant 1032 : index
    %c0_17 = arith.constant 0 : index
    %26 = vector.load %arg2[%c1032, %c0_17] : memref<1040x256xf32, #tpu.memory_space<vmem>>, vector<1x128xf32>
    %27 = vector.broadcast %26 : vector<1x128xf32> to vector<8x128xf32>
    %28 = arith.addf %25, %27 : vector<8x128xf32>
    %c0_18 = arith.constant 0 : index
    %c0_19 = arith.constant 0 : index
    %29 = vector.load %arg3[%c0_18, %c0_19] : memref<8x128xf32, #tpu.memory_space<vmem>>, vector<8x128xf32>
    tpu.vector_store %arg3[%c0_18, %c0_19], %28 {strides = array<i32>} : memref<8x128xf32, #tpu.memory_space<vmem>>, vector<8x128xf32>,
    return
  }
  func.func @transform_0(%arg0: i32) -> (i32, i32) {
    %c0_i32 = arith.constant 0 : i32
    %c0_i32_0 = arith.constant 0 : i32
    return %arg0, %c0_i32 : i32, i32
  }
  func.func @transform_1(%arg0: i32) -> (i32, i32) {
    %c0_i32 = arith.constant 0 : i32
    %c0_i32_0 = arith.constant 0 : i32
    %c0_i32_1 = arith.constant 0 : i32
    return %c0_i32, %c0_i32_0 : i32, i32
  }
  func.func @transform_2(%arg0: i32) -> (i32, i32) {
    %c0_i32 = arith.constant 0 : i32
    %c0_i32_0 = arith.constant 0 : i32
    return %arg0, %c0_i32 : i32, i32
  }
}

</mosaic_0001>

<bundles_post_ra>
// kernel: _forward_batched.1
= control target key start
LH: loop header
LB: loop body
LE: loop exit
PB: predicated region body
PF: predicated region fallthrough
CT: control target
= control target key end

     0   :  { %7 = vsyncpa [#allocation3], 0  ;;  %s1249_s9 = smov 0   ;;  %s1324_s0 = inlined_call_operand.vmem [shape: f32[16,128], index: 0, kind: input, shape index: {}]   ;;  %s1325_s1 = inlined_call_operand.hbm [shape: f32[1040,256], index: 1, kind: input, shape index: {}]   ;;  %s1326_s2 = inlined_call_operand.vmem [shape: f32[16,128], index: 2, kind: output, shape index: {}]  }
   0x1 LB: > { %s1255_s10 = sadd.s32 4294967295, %s1228_s9   ;;  %p900_p0 = scmp.ge.s32.totalorder %s1228_s9, 1  ;;  %s1228_s9 = sphi %s1249_s9, %s13_s9  }
   0x2   : > { %p91_p1 = scmp.lt.s32.totalorder %s1228_s9, 3  ;;  %s1230_s11 = smov [#allocation2]  }
   0x3   : > { %s103_s12 = sshll.u32 %s1230_s11, 4  ;;  %p1327_p3 = scmp.eq.s32.totalorder %s1255_s10, 0  ;;  %s104_s12 = int_to_ptr.vmem [resolvable:$true] %s103_s12 }
   0x4   : > { %p1259_p2 = pnand %p900_p0, %p91_p1  ;;  %s1190_s17 = scalar_lea.hbm %s1325_s1, 33280 }
   0x5   : > { %p1191_p6 = scmp.ne.s32.totalorder %s1325_s1, %s1190_s17  ;;  %p1197_p10 = scmp.lt.u32.totalorder %s1190_s17, %s1325_s1 }
   0x6   : > { %s1329_s13 = scalar_select %p1259_p2, 1, 0 }
   0x7   : > { %p1172_p4 = pneg %p1259_p2 }
   0x9   : > { %p1268_p5 = pnand %p1327_p3, %p1172_p4 }
   0xb   : > { %p1192_p7 = pneg %p1268_p5 }
   0xd   : > { %p1193_p8 = pnand %p1192_p7, %p1191_p6 }
   0xf   : > { %p1194_p9 = pneg %p1193_p8 }
  0x11   : > { %p1199_p11 = pnand %p1197_p10, %p1194_p9 }
  0x13   : > { %1202 = shalt.err (!%p1199_p11)
}
  0x14   : > { %s1203_s22 = scalar_lea.vmem %s104_s12, 33280  ;;  %p1211_p1 = scmp.lt.s32.totalorder %s104_s12, %s104_s12 }
  0x15   : > { %p1204_p12 = scmp.ne.s32.totalorder %s104_s12, %s1203_s22  ;;  %p1212_p4 = scmp.lt.s32.totalorder %s1203_s22, %s1203_s22 }
  0x17   : > { %p1206_p13 = pnand %p1204_p12, %p1192_p7  ;;  %p1213_p3 = por %p1212_p4, %p1211_p1 }
  0x19   : > { %p1207_p0 = pneg %p1206_p13 }
  0x1b   : > { %p1214_p2 = pnand %p1213_p3, %p1207_p0 }
  0x1d   : > { %1217 = shalt.err (!%p1214_p2)
}
  0x1e   : > { %s1231_s23 = smov 256   ;;  %s1232_s24 = smov 16  }
  0x1f   : > { %1175 = dma.hbm_to_vmem [thread:$0]  (!%p1268_p5), %s1325_s1, 33280, %s104_s12, [#allocation3], %s1231_s23, %s1231_s23, %s1232_s24  }
  0x20   : > { %p1331_p6 = scmp.ne.s32.totalorder %s1329_s13, 0 }
  0x21   : > { %p1332_p8 = scmp.eq.s32.totalorder (!%p1331_p6), %s1255_s10, 0 }
  0x22   : > { %126 = sbr.rel (%p1331_p6) target bundleno = 768 (0x300), region = 28 }
  0x29   : > { %1223 = dma.done.wait (%p1332_p8), [#allocation3], 33280   ;;  %p1333_p7 = pmov %p1332_p8 }
  0x2a   : > { %v1233_v0 = vmov 0.0   ;;  %v156_v1 = vld [vmem:[#allocation2 + $0x8] sm:$0xff]  ;;  %v158_v2 = vld [vmem:[#allocation2 + $0x18] sm:$0xff]  ;;  %v155_v6 = vld [vmem:[#allocation2] sm:$0xff]  ;;  %p146_p2 = scmp.lt.s32.totalorder %s1255_s10, 1 }
  0x2b   : > { %1225 = vsyncadd (%p1333_p7), [#allocation3], 4294934016  ;;  %251 = vmatprep.mubr.f32.mxu0 %v1233_v0  ;;  %354 = vmatprep.mubr.f32.mxu1 %v1233_v0  ;;  %v259_v3 = vld [vmem:[#allocation2 + $0x108] sm:$0xff]  ;;  %v944_v4 = vpack.c.bf16 %v158_v2, %v156_v1  ;;  %v261_v5 = vld [vmem:[#allocation2 + $0x118] sm:$0xff] }
  0x2c   : > { %v157_v7 = vld [vmem:[#allocation2 + $0x10] sm:$0xff]  ;;  %v976_v8 = vpack.c.bf16 %v261_v5, %v259_v3  ;;  %v258_v10 = vld [vmem:[#allocation2 + $0x100] sm:$0xff]  ;;  %v160_v12 = vld [vmem:[#allocation2 + $0x28] sm:$0xff]  ;;  %s1335_s10 = smov (!%p146_p2, %s1255_s10), 1 }
  0x2d   : > { %v946_v9 = vpack.c.bf16 %v157_v7, %v155_v6  ;;  %v260_v11 = vld [vmem:[#allocation2 + $0x110] sm:$0xff]  ;;  %945 = vmatprep.subr.bf16.mxu0 %v944_v4  ;;  %v162_v14 = vld [vmem:[#allocation2 + $0x38] sm:$0xff]  ;;  %v263_v15 = vld [vmem:[#allocation2 + $0x128] sm:$0xff]  ;;  %s905_s27 = sshll.u32 %s1335_s10, 3 }
  0x2e   : > { %v978_v13 = vpack.c.bf16 %v260_v11, %v258_v10  ;;  %v265_v16 = vld [vmem:[#allocation2 + $0x138] sm:$0xff]  ;;  %977 = vmatprep.subr.bf16.mxu1 %v976_v8  ;;  %v948_v17 = vpack.c.bf16 %v162_v14, %v160_v12  ;;  %v159_v19 = vld [vmem:[#allocation2 + $0x20] sm:$0xff]  ;;  %v161_v20 = vld [vmem:[#allocation2 + $0x30] sm:$0xff]  ;;  %s149_s30 = scalar_lea.vmem %s1324_s0, %s905_s27  ;;  %s153_s5 = scalar_lea.vmem %s1326_s2, %s905_s27 }
  0x2f   : > { %947 = vmatpush1.bf16.msra.mxu0 %v946_v9  ;;  %v980_v18 = vpack.c.bf16 %v265_v16, %v263_v15  ;;  %v262_v21 = vld [vmem:[#allocation2 + $0x120] sm:$0xff]  ;;  %v950_v22 = vpack.c.bf16 %v161_v20, %v159_v19  ;;  %v264_v23 = vld [vmem:[#allocation2 + $0x130] sm:$0xff]  ;;  %v164_v24 = vld [vmem:[#allocation2 + $0x48] sm:$0xff] }
  0x30   : > { %979 = vmatpush1.bf16.msra.mxu1 %v978_v13  ;;  %v166_v25 = vld [vmem:[#allocation2 + $0x58] sm:$0xff]  ;;  %949 = vmatprep.subr.bf16.mxu0 %v948_v17  ;;  %v982_v26 = vpack.c.bf16 %v264_v23, %v262_v21  ;;  %v267_v28 = vld [vmem:[#allocation2 + $0x148] sm:$0xff]  ;;  %v163_v30 = vld [vmem:[#allocation2 + $0x40] sm:$0xff] }
  0x31   : > { %981 = vmatprep.subr.bf16.mxu1 %v980_v18  ;;  %v952_v27 = vpack.c.bf16 %v166_v25, %v164_v24  ;;  %v269_v29 = vld [vmem:[#allocation2 + $0x158] sm:$0xff]  ;;  %v165_v32 = vld [vmem:[#allocation2 + $0x50] sm:$0xff]  ;;  %v266_v33 = vld [vmem:[#allocation2 + $0x140] sm:$0xff] }
  0x32   : > { %v984_v31 = vpack.c.bf16 %v269_v29, %v267_v28  ;;  %v268_v34 = vld [vmem:[#allocation2 + $0x150] sm:$0xff]  ;;  %v954_v35 = vpack.c.bf16 %v165_v32, %v163_v30  ;;  %v168_v36 = vld [vmem:[#allocation2 + $0x68] sm:$0xff]  ;;  %v170_v37 = vld [vmem:[#allocation2 + $0x78] sm:$0xff] }
  0x33   : > { %951 = vmatpush1.bf16.msra.mxu0 %v950_v22  ;;  %v271_v38 = vld [vmem:[#allocation2 + $0x168] sm:$0xff]  ;;  %v986_v39 = vpack.c.bf16 %v268_v34, %v266_v33  ;;  %v956_v40 = vpack.c.bf16 %v170_v37, %v168_v36  ;;  %v273_v41 = vld [vmem:[#allocation2 + $0x178] sm:$0xff]  ;;  %v167_v42 = vld [vmem:[#allocation2 + $0x60] sm:$0xff] }
  0x34   : > { %983 = vmatpush1.bf16.msra.mxu1 %v982_v26  ;;  %953 = vmatprep.subr.bf16.mxu0 %v952_v27  ;;  %v169_v43 = vld [vmem:[#allocation2 + $0x70] sm:$0xff]  ;;  %v988_v44 = vpack.c.bf16 %v273_v41, %v271_v38  ;;  %v270_v45 = vld [vmem:[#allocation2 + $0x160] sm:$0xff]  ;;  %v172_v47 = vld [vmem:[#allocation2 + $0x88] sm:$0xff] }
  0x35   : > { %985 = vmatprep.subr.bf16.mxu1 %v984_v31  ;;  %v272_v46 = vld [vmem:[#allocation2 + $0x170] sm:$0xff]  ;;  %v174_v48 = vld [vmem:[#allocation2 + $0x98] sm:$0xff]  ;;  %v275_v49 = vld [vmem:[#allocation2 + $0x188] sm:$0xff]  ;;  %v958_v51 = vpack.c.bf16 %v169_v43, %v167_v42 }
  0x36   : > { %v277_v50 = vld [vmem:[#allocation2 + $0x198] sm:$0xff]  ;;  %v990_v52 = vpack.c.bf16 %v272_v46, %v270_v45  ;;  %v960_v53 = vpack.c.bf16 %v174_v48, %v172_v47  ;;  %v171_v54 = vld [vmem:[#allocation2 + $0x80] sm:$0xff]  ;;  %v173_v55 = vld [vmem:[#allocation2 + $0x90] sm:$0xff] }
  0x37   : > { %955 = vmatpush1.bf16.msra.mxu0 %v954_v35  ;;  %v274_v56 = vld [vmem:[#allocation2 + $0x180] sm:$0xff]  ;;  %v992_v57 = vpack.c.bf16 %v277_v50, %v275_v49  ;;  %v276_v58 = vld [vmem:[#allocation2 + $0x190] sm:$0xff]  ;;  %v176_v59 = vld [vmem:[#allocation2 + $0xa8] sm:$0xff]  ;;  %v962_v63 = vpack.c.bf16 %v173_v55, %v171_v54 }
  0x38   : > { %987 = vmatpush1.bf16.msra.mxu1 %v986_v39  ;;  %957 = vmatprep.subr.bf16.mxu0 %v956_v40  ;;  %v178_v60 = vld [vmem:[#allocation2 + $0xb8] sm:$0xff]  ;;  %v279_v61 = vld [vmem:[#allocation2 + $0x1a8] sm:$0xff]  ;;  %v994_v1 = vpack.c.bf16 %v276_v58, %v274_v56  ;;  %v175_v3 = vld [vmem:[#allocation2 + $0xa0] sm:$0xff] }
  0x39   : > { %989 = vmatprep.subr.bf16.mxu1 %v988_v44  ;;  %v281_v62 = vld [vmem:[#allocation2 + $0x1b8] sm:$0xff]  ;;  %v964_v2 = vpack.c.bf16 %v178_v60, %v176_v59  ;;  %v177_v4 = vld [vmem:[#allocation2 + $0xb0] sm:$0xff]  ;;  %v278_v5 = vld [vmem:[#allocation2 + $0x1a0] sm:$0xff] }
  0x3a   : > { %v996_v6 = vpack.c.bf16 %v281_v62, %v279_v61  ;;  %v280_v7 = vld [vmem:[#allocation2 + $0x1b0] sm:$0xff]  ;;  %v180_v8 = vld [vmem:[#allocation2 + $0xc8] sm:$0xff]  ;;  %v182_v9 = vld [vmem:[#allocation2 + $0xd8] sm:$0xff]  ;;  %v966_v12 = vpack.c.bf16 %v177_v4, %v175_v3 }
  0x3b   : > { %959 = vmatpush1.bf16.msra.mxu0 %v958_v51  ;;  %v283_v10 = vld [vmem:[#allocation2 + $0x1c8] sm:$0xff]  ;;  %v285_v11 = vld [vmem:[#allocation2 + $0x1d8] sm:$0xff]  ;;  %v998_v13 = vpack.c.bf16 %v280_v7, %v278_v5  ;;  %v968_v14 = vpack.c.bf16 %v182_v9, %v180_v8  ;;  %v179_v15 = vld [vmem:[#allocation2 + $0xc0] sm:$0xff] }
  0x3c   : > { %991 = vmatpush1.bf16.msra.mxu1 %v990_v52  ;;  %961 = vmatprep.subr.bf16.mxu0 %v960_v53  ;;  %v181_v16 = vld [vmem:[#allocation2 + $0xd0] sm:$0xff]  ;;  %v282_v17 = vld [vmem:[#allocation2 + $0x1c0] sm:$0xff]  ;;  %v1000_v18 = vpack.c.bf16 %v285_v11, %v283_v10  ;;  %v184_v20 = vld [vmem:[#allocation2 + $0xe8] sm:$0xff] }
  0x3d   : > { %993 = vmatprep.subr.bf16.mxu1 %v992_v57  ;;  %v284_v19 = vld [vmem:[#allocation2 + $0x1d0] sm:$0xff]  ;;  %v186_v21 = vld [vmem:[#allocation2 + $0xf8] sm:$0xff]  ;;  %v287_v22 = vld [vmem:[#allocation2 + $0x1e8] sm:$0xff]  ;;  %v970_v24 = vpack.c.bf16 %v181_v16, %v179_v15 }
  0x3e   : > { %v289_v23 = vld [vmem:[#allocation2 + $0x1f8] sm:$0xff]  ;;  %v1002_v25 = vpack.c.bf16 %v284_v19, %v282_v17  ;;  %v972_v26 = vpack.c.bf16 %v186_v21, %v184_v20  ;;  %v183_v27 = vld [vmem:[#allocation2 + $0xe0] sm:$0xff]  ;;  %v185_v28 = vld [vmem:[#allocation2 + $0xf0] sm:$0xff] }
  0x3f   : > { %963 = vmatpush1.bf16.msra.mxu0 %v962_v63  ;;  %v286_v29 = vld [vmem:[#allocation2 + $0x1e0] sm:$0xff]  ;;  %v1004_v30 = vpack.c.bf16 %v289_v23, %v287_v22  ;;  %v288_v31 = vld [vmem:[#allocation2 + $0x1f0] sm:$0xff]  ;;  %v362_v32 = vld [vmem:[#allocation2 + $0x208] sm:$0xff]  ;;  %v974_v36 = vpack.c.bf16 %v185_v28, %v183_v27 }
  0x40   : > { %995 = vmatpush1.bf16.msra.mxu1 %v994_v1  ;;  %965 = vmatprep.subr.bf16.mxu0 %v964_v2  ;;  %v364_v33 = vld [vmem:[#allocation2 + $0x218] sm:$0xff]  ;;  %v465_v34 = vld [vmem:[#allocation2 + $0x308] sm:$0xff]  ;;  %v1006_v37 = vpack.c.bf16 %v288_v31, %v286_v29  ;;  %v361_v39 = vld [vmem:[#allocation2 + $0x200] sm:$0xff] }
  0x41   : > { %997 = vmatprep.subr.bf16.mxu1 %v996_v6  ;;  %v467_v35 = vld [vmem:[#allocation2 + $0x318] sm:$0xff]  ;;  %v1008_v38 = vpack.c.bf16 %v364_v33, %v362_v32  ;;  %v363_v40 = vld [vmem:[#allocation2 + $0x210] sm:$0xff]  ;;  %v464_v41 = vld [vmem:[#allocation2 + $0x300] sm:$0xff] }
  0x42   : > { %v1040_v42 = vpack.c.bf16 %v467_v35, %v465_v34  ;;  %v466_v43 = vld [vmem:[#allocation2 + $0x310] sm:$0xff]  ;;  %v366_v44 = vld [vmem:[#allocation2 + $0x228] sm:$0xff]  ;;  %v368_v45 = vld [vmem:[#allocation2 + $0x238] sm:$0xff]  ;;  %v1010_v49 = vpack.c.bf16 %v363_v40, %v361_v39 }
  0x43   : > { %967 = vmatpush1.bf16.msra.mxu0 %v966_v12  ;;  %v469_v46 = vld [vmem:[#allocation2 + $0x328] sm:$0xff]  ;;  %v471_v47 = vld [vmem:[#allocation2 + $0x338] sm:$0xff]  ;;  %v1308_v48 = vld [vmem:[%s149_s30] sm:$0xff]  ;;  %v1042_v50 = vpack.c.bf16 %v466_v43, %v464_v41  ;;  %v1012_v51 = vpack.c.bf16 %v368_v45, %v366_v44 }
  0x44   : > { %999 = vmatpush1.bf16.msra.mxu1 %v998_v13  ;;  %969 = vmatprep.subr.bf16.mxu0 %v968_v14  ;;  %v365_v52 = vld [vmem:[#allocation2 + $0x220] sm:$0xff]  ;;  %v367_v53 = vld [vmem:[#allocation2 + $0x230] sm:$0xff]  ;;  %v1044_v55 = vpack.c.bf16 %v471_v47, %v469_v46  ;;  %v370_v57 = vld [vmem:[#allocation2 + $0x248] sm:$0xff] }
  0x45   : > { %1001 = vmatprep.subr.bf16.mxu1 %v1000_v18  ;;  %v468_v54 = vld [vmem:[#allocation2 + $0x320] sm:$0xff]  ;;  %v470_v56 = vld [vmem:[#allocation2 + $0x330] sm:$0xff]  ;;  %v372_v58 = vld [vmem:[#allocation2 + $0x258] sm:$0xff]  ;;  %v1014_v61 = vpack.c.bf16 %v367_v53, %v365_v52 }
  0x46   : > { %v473_v59 = vld [vmem:[#allocation2 + $0x348] sm:$0xff]  ;;  %v475_v60 = vld [vmem:[#allocation2 + $0x358] sm:$0xff]  ;;  %v1046_v62 = vpack.c.bf16 %v470_v56, %v468_v54  ;;  %v1016_v63 = vpack.c.bf16 %v372_v58, %v370_v57  ;;  %v369_v1 = vld [vmem:[#allocation2 + $0x240] sm:$0xff] }
  0x47   : > { %971 = vmatpush1.bf16.msra.mxu0 %v970_v24  ;;  %v371_v2 = vld [vmem:[#allocation2 + $0x250] sm:$0xff]  ;;  %v472_v3 = vld [vmem:[#allocation2 + $0x340] sm:$0xff]  ;;  %v1048_v4 = vpack.c.bf16 %v475_v60, %v473_v59  ;;  %v374_v6 = vld [vmem:[#allocation2 + $0x268] sm:$0xff] }
  0x48   : > { %1003 = vmatpush1.bf16.msra.mxu1 %v1002_v25  ;;  %973 = vmatprep.subr.bf16.mxu0 %v972_v26  ;;  %v474_v5 = vld [vmem:[#allocation2 + $0x350] sm:$0xff]  ;;  %v376_v7 = vld [vmem:[#allocation2 + $0x278] sm:$0xff]  ;;  %v477_v8 = vld [vmem:[#allocation2 + $0x368] sm:$0xff]  ;;  %v1018_v10 = vpack.c.bf16 %v371_v2, %v369_v1 }
  0x49   : > { %1005 = vmatprep.subr.bf16.mxu1 %v1004_v30  ;;  %v479_v9 = vld [vmem:[#allocation2 + $0x378] sm:$0xff]  ;;  %v1050_v11 = vpack.c.bf16 %v474_v5, %v472_v3  ;;  %v1020_v12 = vpack.c.bf16 %v376_v7, %v374_v6  ;;  %v373_v13 = vld [vmem:[#allocation2 + $0x260] sm:$0xff]  ;;  %v375_v14 = vld [vmem:[#allocation2 + $0x270] sm:$0xff] }
  0x4a   : > { %v476_v15 = vld [vmem:[#allocation2 + $0x360] sm:$0xff]  ;;  %v1052_v16 = vpack.c.bf16 %v479_v9, %v477_v8  ;;  %v478_v17 = vld [vmem:[#allocation2 + $0x370] sm:$0xff]  ;;  %v378_v18 = vld [vmem:[#allocation2 + $0x288] sm:$0xff]  ;;  %v1022_v22 = vpack.c.bf16 %v375_v14, %v373_v13 }
  0x4b   : > { %975 = vmatpush1.bf16.msra.mxu0 %v974_v36  ;;  %v380_v19 = vld [vmem:[#allocation2 + $0x298] sm:$0xff]  ;;  %v481_v20 = vld [vmem:[#allocation2 + $0x388] sm:$0xff]  ;;  %v377_v24 = vld [vmem:[#allocation2 + $0x280] sm:$0xff] }
  0x4c   : > { %1007 = vmatpush1.bf16.msra.mxu1 %v1006_v37  ;;  %1009 = vmatprep.subr.bf16.mxu0 %v1008_v38  ;;  %v483_v21 = vld [vmem:[#allocation2 + $0x398] sm:$0xff]  ;;  %v1024_v23 = vpack.c.bf16 %v380_v19, %v378_v18  ;;  %v379_v25 = vld [vmem:[#allocation2 + $0x290] sm:$0xff]  ;;  %v480_v26 = vld [vmem:[#allocation2 + $0x380] sm:$0xff] }
  0x4d   : > { %1041 = vmatprep.subr.bf16.mxu1 %v1040_v42  ;;  %v1056_v27 = vpack.c.bf16 %v483_v21, %v481_v20  ;;  %v482_v28 = vld [vmem:[#allocation2 + $0x390] sm:$0xff]  ;;  %v382_v29 = vld [vmem:[#allocation2 + $0x2a8] sm:$0xff]  ;;  %v384_v30 = vld [vmem:[#allocation2 + $0x2b8] sm:$0xff]  ;;  %v1026_v33 = vpack.c.bf16 %v379_v25, %v377_v24 }
  0x4e   : > { %252 = vmatmul.mubr.f32.vlgmr.msra.gmra.mrb[0].mxu0 %v1308_v48  ;;  %v485_v31 = vld [vmem:[#allocation2 + $0x3a8] sm:$0xff]  ;;  %v487_v32 = vld [vmem:[#allocation2 + $0x3b8] sm:$0xff]  ;;  %v1058_v34 = vpack.c.bf16 %v482_v28, %v480_v26  ;;  %v1028_v35 = vpack.c.bf16 %v384_v30, %v382_v29  ;;  %v381_v36 = vld [vmem:[#allocation2 + $0x2a0] sm:$0xff] }
  0x4f   : > { %355 = vmatmul.mubr.f32.vlgmr.msra.gmra.mrb[0].mxu1 %v1308_v48  ;;  %1011 = vmatpush1.bf16.msra.mxu0 %v1010_v49  ;;  %v383_v37 = vld [vmem:[#allocation2 + $0x2b0] sm:$0xff]  ;;  %v484_v38 = vld [vmem:[#allocation2 + $0x3a0] sm:$0xff]  ;;  %v1060_v39 = vpack.c.bf16 %v487_v32, %v485_v31  ;;  %v386_v41 = vld [vmem:[#allocation2 + $0x2c8] sm:$0xff] }
  0x50   : > { %1043 = vmatpush1.bf16.msra.mxu1 %v1042_v50  ;;  %1013 = vmatprep.subr.bf16.mxu0 %v1012_v51  ;;  %v486_v40 = vld [vmem:[#allocation2 + $0x3b0] sm:$0xff]  ;;  %v388_v42 = vld [vmem:[#allocation2 + $0x2d8] sm:$0xff]  ;;  %v489_v43 = vld [vmem:[#allocation2 + $0x3c8] sm:$0xff]  ;;  %v1030_v45 = vpack.c.bf16 %v383_v37, %v381_v36 }
  0x51   : > { %1045 = vmatprep.subr.bf16.mxu1 %v1044_v55  ;;  %457 = vmatprep.mubr.f32.mxu0 %v1233_v0  ;;  %v491_v44 = vld [vmem:[#allocation2 + $0x3d8] sm:$0xff]  ;;  %v1062_v46 = vpack.c.bf16 %v486_v40, %v484_v38  ;;  %v1032_v47 = vpack.c.bf16 %v388_v42, %v386_v41  ;;  %v385_v49 = vld [vmem:[#allocation2 + $0x2c0] sm:$0xff]  ;;  %v387_v50 = vld [vmem:[#allocation2 + $0x2d0] sm:$0xff] }
  0x52   : > { %560 = vmatprep.mubr.f32.mxu1 %v1233_v0  ;;  %v1054_v0 = vpack.c.bf16 %v478_v17, %v476_v15  ;;  %v488_v51 = vld [vmem:[#allocation2 + $0x3c0] sm:$0xff]  ;;  %v1064_v52 = vpack.c.bf16 %v491_v44, %v489_v43  ;;  %v490_v53 = vld [vmem:[#allocation2 + $0x3d0] sm:$0xff]  ;;  %v390_v54 = vld [vmem:[#allocation2 + $0x2e8] sm:$0xff]  ;;  %v1034_v58 = vpack.c.bf16 %v387_v50, %v385_v49 }
  0x53   : > { %1015 = vmatpush1.bf16.msra.mxu0 %v1014_v61  ;;  %v392_v55 = vld [vmem:[#allocation2 + $0x2f8] sm:$0xff]  ;;  %v493_v56 = vld [vmem:[#allocation2 + $0x3e8] sm:$0xff]  ;;  %v1066_v59 = vpack.c.bf16 %v490_v53, %v488_v51  ;;  %v389_v61 = vld [vmem:[#allocation2 + $0x2e0] sm:$0xff] }
  0x54   : > { %1047 = vmatpush1.bf16.msra.mxu1 %v1046_v62  ;;  %1017 = vmatprep.subr.bf16.mxu0 %v1016_v63  ;;  %v495_v57 = vld [vmem:[#allocation2 + $0x3f8] sm:$0xff]  ;;  %v1036_v60 = vpack.c.bf16 %v392_v55, %v390_v54  ;;  %v391_v62 = vld [vmem:[#allocation2 + $0x2f0] sm:$0xff]  ;;  %v492_v63 = vld [vmem:[#allocation2 + $0x3e0] sm:$0xff] }
  0x55   : > { %1049 = vmatprep.subr.bf16.mxu1 %v1048_v4  ;;  %v1068_v1 = vpack.c.bf16 %v495_v57, %v493_v56  ;;  %v494_v2 = vld [vmem:[#allocation2 + $0x3f0] sm:$0xff]  ;;  %v580_v3 = vld [vmem:[#allocation2 + $0x408] sm:$0xff]  ;;  %v582_v4 = vld [vmem:[#allocation2 + $0x418] sm:$0xff]  ;;  %v1038_v5 = vpack.c.bf16 %v391_v62, %v389_v61 }
  0x56   : > { %v1070_v6 = vpack.c.bf16 %v494_v2, %v492_v63  ;;  %v1072_v7 = vpack.c.bf16 %v582_v4, %v580_v3  ;;  %v579_v8 = vld [vmem:[#allocation2 + $0x400] sm:$0xff]  ;;  %v581_v9 = vld [vmem:[#allocation2 + $0x410] sm:$0xff]  ;;  %v590_v17 = vld [vmem:[#allocation2 + $0x458] sm:$0xff] }
  0x57   : > { %1019 = vmatpush1.bf16.msra.mxu0 %v1018_v10  ;;  %v584_v10 = vld [vmem:[#allocation2 + $0x428] sm:$0xff]  ;;  %v583_v14 = vld [vmem:[#allocation2 + $0x420] sm:$0xff]  ;;  %v585_v15 = vld [vmem:[#allocation2 + $0x430] sm:$0xff] }
  0x58   : > { %1051 = vmatpush1.bf16.msra.mxu1 %v1050_v11  ;;  %1021 = vmatprep.subr.bf16.mxu0 %v1020_v12  ;;  %v586_v11 = vld [vmem:[#allocation2 + $0x438] sm:$0xff]  ;;  %v1074_v12 = vpack.c.bf16 %v581_v9, %v579_v8  ;;  %v1078_v18 = vpack.c.bf16 %v585_v15, %v583_v14  ;;  %v587_v20 = vld [vmem:[#allocation2 + $0x440] sm:$0xff]  ;;  %v589_v21 = vld [vmem:[#allocation2 + $0x450] sm:$0xff] }
  0x59   : > { %1053 = vmatprep.subr.bf16.mxu1 %v1052_v16  ;;  %v1076_v13 = vpack.c.bf16 %v586_v11, %v584_v10  ;;  %v588_v16 = vld [vmem:[#allocation2 + $0x448] sm:$0xff]  ;;  %v591_v25 = vld [vmem:[#allocation2 + $0x460] sm:$0xff]  ;;  %v593_v26 = vld [vmem:[#allocation2 + $0x470] sm:$0xff] }
  0x5a   : > { %v1080_v19 = vpack.c.bf16 %v590_v17, %v588_v16  ;;  %v598_v28 = vld [vmem:[#allocation2 + $0x498] sm:$0xff]  ;;  %v1086_v29 = vpack.c.bf16 %v593_v26, %v591_v25  ;;  %v595_v30 = vld [vmem:[#allocation2 + $0x480] sm:$0xff]  ;;  %v597_v31 = vld [vmem:[#allocation2 + $0x490] sm:$0xff] }
  0x5b   : > { %1023 = vmatpush1.bf16.msra.mxu0 %v1022_v22  ;;  %v592_v22 = vld [vmem:[#allocation2 + $0x468] sm:$0xff]  ;;  %v599_v36 = vld [vmem:[#allocation2 + $0x4a0] sm:$0xff]  ;;  %v601_v37 = vld [vmem:[#allocation2 + $0x4b0] sm:$0xff] }
  0x5c   : > { %1055 = vmatpush1.bf16.msra.mxu1 %v1054_v0  ;;  %1025 = vmatprep.subr.bf16.mxu0 %v1024_v23  ;;  %v594_v0 = vld [vmem:[#allocation2 + $0x478] sm:$0xff]  ;;  %v1082_v23 = vpack.c.bf16 %v589_v21, %v587_v20  ;;  %v600_v32 = vld [vmem:[#allocation2 + $0x4a8] sm:$0xff]  ;;  %v1094_v38 = vpack.c.bf16 %v601_v37, %v599_v36  ;;  %v603_v42 = vld [vmem:[#allocation2 + $0x4c0] sm:$0xff] }
  0x5d   : > { %1057 = vmatprep.subr.bf16.mxu1 %v1056_v27  ;;  %v1084_v24 = vpack.c.bf16 %v594_v0, %v592_v22  ;;  %v596_v27 = vld [vmem:[#allocation2 + $0x488] sm:$0xff]  ;;  %v606_v40 = vld [vmem:[#allocation2 + $0x4d8] sm:$0xff]  ;;  %v605_v43 = vld [vmem:[#allocation2 + $0x4d0] sm:$0xff] }
  0x5e   : > { %v1098_v44 = vpack.c.bf16 %v605_v43, %v603_v42  ;;  %v609_v50 = vld [vmem:[#allocation2 + $0x4f0] sm:$0xff]  ;;  %v612_v51 = vld [vmem:[#allocation2 + $0x508] sm:$0xff]  ;;  %v611_v55 = vld [vmem:[#allocation2 + $0x500] sm:$0xff] }
  0x5f   : > { %1027 = vmatpush1.bf16.msra.mxu0 %v1026_v33  ;;  %v602_v33 = vld [vmem:[#allocation2 + $0x4b8] sm:$0xff]  ;;  %v613_v56 = vld [vmem:[#allocation2 + $0x510] sm:$0xff]  ;;  %v616_v57 = vld [vmem:[#allocation2 + $0x528] sm:$0xff] }
  0x60   : > { %1059 = vmatpush1.bf16.msra.mxu1 %v1058_v34  ;;  %1029 = vmatprep.subr.bf16.mxu0 %v1028_v35  ;;  %v1090_v34 = vpack.c.bf16 %v597_v31, %v595_v30  ;;  %v1092_v35 = vpack.c.bf16 %v602_v33, %v600_v32  ;;  %v615_v61 = vld [vmem:[#allocation2 + $0x520] sm:$0xff]  ;;  %v617_v62 = vld [vmem:[#allocation2 + $0x530] sm:$0xff]  ;;  %v620_v63 = vld [vmem:[#allocation2 + $0x548] sm:$0xff] }
  0x61   : > { %1061 = vmatprep.subr.bf16.mxu1 %v1060_v39  ;;  %v604_v39 = vld [vmem:[#allocation2 + $0x4c8] sm:$0xff]  ;;  %v1110_v2 = vpack.c.bf16 %v617_v62, %v615_v61  ;;  %v619_v4 = vld [vmem:[#allocation2 + $0x540] sm:$0xff]  ;;  %v625_v11 = vld [vmem:[#allocation2 + $0x570] sm:$0xff] }
  0x62   : > { %v1096_v41 = vpack.c.bf16 %v606_v40, %v604_v39  ;;  %v623_v10 = vld [vmem:[#allocation2 + $0x560] sm:$0xff]  ;;  %v629_v17 = vld [vmem:[#allocation2 + $0x590] sm:$0xff]  ;;  %v638_v25 = vld [vmem:[#allocation2 + $0x5d8] sm:$0xff] }
  0x63   : > { %1031 = vmatpush1.bf16.msra.mxu0 %v1030_v45  ;;  %v608_v45 = vld [vmem:[#allocation2 + $0x4e8] sm:$0xff]  ;;  %v1118_v14 = vpack.c.bf16 %v625_v11, %v623_v10  ;;  %v627_v16 = vld [vmem:[#allocation2 + $0x580] sm:$0xff]  ;;  %v633_v0 = vld [vmem:[#allocation2 + $0x5b0] sm:$0xff] }
  0x64   : > { %1063 = vmatpush1.bf16.msra.mxu1 %v1062_v46  ;;  %1033 = vmatprep.subr.bf16.mxu0 %v1032_v47  ;;  %v610_v46 = vld [vmem:[#allocation2 + $0x4f8] sm:$0xff]  ;;  %v607_v47 = vld [vmem:[#allocation2 + $0x4e0] sm:$0xff]  ;;  %v1122_v20 = vpack.c.bf16 %v629_v17, %v627_v16  ;;  %v641_v33 = vld [vmem:[#allocation2 + $0x5f0] sm:$0xff] }
  0x65   : > { %1065 = vmatprep.subr.bf16.mxu1 %v1064_v52  ;;  %v1100_v49 = vpack.c.bf16 %v610_v46, %v608_v45  ;;  %v614_v52 = vld [vmem:[#allocation2 + $0x518] sm:$0xff]  ;;  %v1102_v53 = vpack.c.bf16 %v609_v50, %v607_v47  ;;  %v631_v22 = vld [vmem:[#allocation2 + $0x5a0] sm:$0xff]  ;;  %v746_v36 = vld [vmem:[#allocation2 + $0x710] sm:$0xff] }
  0x66   : > { %v1104_v54 = vpack.c.bf16 %v614_v52, %v612_v51  ;;  %v642_v30 = vld [vmem:[#allocation2 + $0x5f8] sm:$0xff]  ;;  %v639_v32 = vld [vmem:[#allocation2 + $0x5e0] sm:$0xff]  ;;  %v730_v39 = vld [vmem:[#allocation2 + $0x610] sm:$0xff] }
  0x67   : > { %1035 = vmatpush1.bf16.msra.mxu0 %v1034_v58  ;;  %v618_v58 = vld [vmem:[#allocation2 + $0x538] sm:$0xff]  ;;  %v729_v37 = vld [vmem:[#allocation2 + $0x600] sm:$0xff]  ;;  %v732_v45 = vld [vmem:[#allocation2 + $0x630] sm:$0xff] }
  0x68   : > { %1067 = vmatpush1.bf16.msra.mxu1 %v1066_v59  ;;  %1037 = vmatprep.subr.bf16.mxu0 %v1036_v60  ;;  %v1106_v59 = vpack.c.bf16 %v613_v56, %v611_v55  ;;  %v1108_v60 = vpack.c.bf16 %v618_v58, %v616_v57  ;;  %v747_v40 = vld [vmem:[#allocation2 + $0x720] sm:$0xff]  ;;  %v1138_v42 = vpack.c.bf16 %v730_v39, %v729_v37  ;;  %v750_v47 = vld [vmem:[#allocation2 + $0x750] sm:$0xff]  ;;  %v646_v37 = vlaneseq }
  0x69   : > { %1069 = vmatprep.subr.bf16.mxu1 %v1068_v1  ;;  %v622_v1 = vld [vmem:[#allocation2 + $0x558] sm:$0xff]  ;;  %v749_v46 = vld [vmem:[#allocation2 + $0x740] sm:$0xff]  ;;  %v734_v52 = vld [vmem:[#allocation2 + $0x650] sm:$0xff] }
  0x6a   : > { %v1112_v3 = vpack.c.bf16 %v622_v1, %v620_v63  ;;  %v1144_v50 = vpack.c.bf16 %v750_v47, %v749_v46  ;;  %v733_v51 = vld [vmem:[#allocation2 + $0x640] sm:$0xff]  ;;  %v736_v58 = vld [vmem:[#allocation2 + $0x670] sm:$0xff] }
  0x6b   : > { %1039 = vmatpush1.bf16.msra.mxu0 %v1038_v5  ;;  %v621_v5 = vld [vmem:[#allocation2 + $0x550] sm:$0xff]  ;;  %v1146_v55 = vpack.c.bf16 %v734_v52, %v733_v51  ;;  %v735_v57 = vld [vmem:[#allocation2 + $0x660] sm:$0xff] }
  0x6c   : > { %1071 = vmatpush1.bf16.msra.mxu1 %v1070_v6  ;;  %1073 = vmatprep.subr.bf16.mxu0 %v1072_v7  ;;  %v624_v6 = vld [vmem:[#allocation2 + $0x568] sm:$0xff]  ;;  %v626_v7 = vld [vmem:[#allocation2 + $0x578] sm:$0xff]  ;;  %v1114_v8 = vpack.c.bf16 %v621_v5, %v619_v4  ;;  %v1150_v61 = vpack.c.bf16 %v736_v58, %v735_v57  ;;  %v737_v63 = vld [vmem:[#allocation2 + $0x680] sm:$0xff] }
  0x6d   : > { %v1116_v9 = vpack.c.bf16 %v626_v7, %v624_v6  ;;  %v738_v1 = vld [vmem:[#allocation2 + $0x690] sm:$0xff]  ;;  %v739_v6 = vld [vmem:[#allocation2 + $0x6a0] sm:$0xff] }
  0x6e   : > { %458 = vmatmul.mubr.f32.vlgmr.msra.gmra.mrb[2].mxu0 %v1308_v48  ;;  %v1154_v4 = vpack.c.bf16 %v738_v1, %v737_v63  ;;  %v740_v7 = vld [vmem:[#allocation2 + $0x6b0] sm:$0xff] }
  0x6f   : > { %561 = vmatmul.mubr.f32.vlgmr.msra.gmra.mrb[2].mxu1 %v1308_v48  ;;  %1075 = vmatpush1.bf16.msra.mxu0 %v1074_v12  ;;  %v1088_v48 = vpack.c.bf16 %v598_v28, %v596_v27  ;;  %v628_v12 = vld [vmem:[#allocation2 + $0x588] sm:$0xff]  ;;  %v635_v27 = vld [vmem:[#allocation2 + $0x5c0] sm:$0xff]  ;;  %v637_v28 = vld [vmem:[#allocation2 + $0x5d0] sm:$0xff]  ;;  %v1158_v10 = vpack.c.bf16 %v740_v7, %v739_v6 }
  0x70   : > { %1077 = vmatprep.subr.bf16.mxu0 %v1076_v13  ;;  %v630_v13 = vld [vmem:[#allocation2 + $0x598] sm:$0xff]  ;;  %v761_v52 = vld [vmem:[#allocation2 + $0x810] ss:$0 sm:$0xff] }
  0x71   : > { %v1120_v15 = vpack.c.bf16 %v630_v13, %v628_v12 }
  0x73   : > { %1079 = vmatpush1.bf16.msra.mxu0 %v1078_v18  ;;  %v632_v18 = vld [vmem:[#allocation2 + $0x5a8] sm:$0xff] }
  0x74   : > { %1081 = vmatprep.subr.bf16.mxu0 %v1080_v19  ;;  %v634_v19 = vld [vmem:[#allocation2 + $0x5b8] sm:$0xff] }
  0x75   : > { %v1124_v21 = vpack.c.bf16 %v634_v19, %v632_v18 }
  0x77   : > { %1083 = vmatpush1.bf16.msra.mxu0 %v1082_v23  ;;  %v1126_v23 = vpack.c.bf16 %v633_v0, %v631_v22 }
  0x78   : > { %1085 = vmatprep.subr.bf16.mxu0 %v1084_v24  ;;  %v636_v24 = vld [vmem:[#allocation2 + $0x5c8] sm:$0xff] }
  0x79   : > { %v1128_v26 = vpack.c.bf16 %v638_v25, %v636_v24 }
  0x7b   : > { %1087 = vmatpush1.bf16.msra.mxu0 %v1086_v29  ;;  %v1130_v29 = vpack.c.bf16 %v637_v28, %v635_v27 }
  0x7c   : > { %1089 = vmatprep.subr.bf16.mxu0 %v1088_v48  ;;  %v640_v48 = vld [vmem:[#allocation2 + $0x5e8] sm:$0xff] }
  0x7d   : > { %v1132_v31 = vpack.c.bf16 %v642_v30, %v640_v48  ;;  %v742_v48 = vld [vmem:[#allocation2 + $0x6d0] sm:$0xff] }
  0x7f   : > { %1091 = vmatpush1.bf16.msra.mxu0 %v1090_v34  ;;  %v1134_v34 = vpack.c.bf16 %v641_v33, %v639_v32  ;;  %v760_v32 = vld [vmem:[#allocation2 + $0x7f0] sm:$0xff] }
  0x80   : > { %1093 = vmatprep.subr.bf16.mxu0 %v1092_v35  ;;  %v745_v35 = vld [vmem:[#allocation2 + $0x700] sm:$0xff] }
  0x83   : > { %1095 = vmatpush1.bf16.msra.mxu0 %v1094_v38  ;;  %v1136_v38 = vpack.c.bf16 %v746_v36, %v745_v35  ;;  %v744_v35 = vld [vmem:[#allocation2 + $0x6f0] sm:$0xff] }
  0x84   : > { %1097 = vmatprep.subr.bf16.mxu0 %v1096_v41  ;;  %v748_v41 = vld [vmem:[#allocation2 + $0x730] sm:$0xff] }
  0x85   : > { %v1140_v43 = vpack.c.bf16 %v748_v41, %v747_v40  ;;  %1137 = vmatprep.subr.bf16.mxu1 %v1136_v38  ;;  %v647_v38 = vshrl.u32 %v646_v37, 7  ;;  %v644_v40 = vld [vmem:[#allocation2 + $0x800] ss:$8 sm:$0x3] }
  0x86   : > { %1139 = vmatpush3.bf16.msra.mxu1 %v1138_v42 }
  0x87   : > { %1099 = vmatpush1.bf16.msra.mxu0 %v1098_v44  ;;  %v731_v44 = vld [vmem:[#allocation2 + $0x620] sm:$0xff]  ;;  %1141 = vmatprep.subr.bf16.mxu1 %v1140_v43  ;;  %v648_v39 = vsub.s32 0, %v647_v38  ;;  %v652_v41 = vsub.s32 1, %v647_v38 }
  0x88   : > { %1101 = vmatprep.subr.bf16.mxu0 %v1100_v49  ;;  %v1142_v49 = vpack.c.bf16 %v732_v45, %v731_v44 }
  0x89   : > { %v649_v42 = vrot.slane %v644_v40, %v648_v39  ;;  %v653_v43 = vrot.slane %v644_v40, %v652_v41 }
  0x8a   : > { %1143 = vmatpush3.bf16.msra.mxu1 %v1142_v49 }
  0x8b   : > { %1103 = vmatpush1.bf16.msra.mxu0 %v1102_v53  ;;  %v751_v53 = vld [vmem:[#allocation2 + $0x760] sm:$0xff]  ;;  %1145 = vmatprep.subr.bf16.mxu1 %v1144_v50 }
  0x8c   : > { %1105 = vmatprep.subr.bf16.mxu0 %v1104_v54  ;;  %v752_v54 = vld [vmem:[#allocation2 + $0x770] sm:$0xff] }
  0x8d   : > { %v1148_v56 = vpack.c.bf16 %v752_v54, %v751_v53 }
  0x8e   : > { %1147 = vmatpush3.bf16.msra.mxu1 %v1146_v55 }
  0x8f   : > { %1107 = vmatpush1.bf16.msra.mxu0 %v1106_v59  ;;  %v753_v59 = vld [vmem:[#allocation2 + $0x780] sm:$0xff]  ;;  %1149 = vmatprep.subr.bf16.mxu1 %v1148_v56 }
  0x90   : > { %1109 = vmatprep.subr.bf16.mxu0 %v1108_v60  ;;  %v754_v60 = vld [vmem:[#allocation2 + $0x790] sm:$0xff] }
  0x91   : > { %v1152_v62 = vpack.c.bf16 %v754_v60, %v753_v59 }
  0x92   : > { %1151 = vmatpush3.bf16.msra.mxu1 %v1150_v61 }
  0x93   : > { %1111 = vmatpush1.bf16.msra.mxu0 %v1110_v2  ;;  %v755_v2 = vld [vmem:[#allocation2 + $0x7a0] sm:$0xff]  ;;  %1153 = vmatprep.subr.bf16.mxu1 %v1152_v62 }
  0x94   : > { %1113 = vmatprep.subr.bf16.mxu0 %v1112_v3  ;;  %v756_v3 = vld [vmem:[#allocation2 + $0x7b0] sm:$0xff] }
  0x95   : > { %v1156_v5 = vpack.c.bf16 %v756_v3, %v755_v2 }
  0x96   : > { %1155 = vmatpush3.bf16.msra.mxu1 %v1154_v4 }
  0x97   : > { %1115 = vmatpush1.bf16.msra.mxu0 %v1114_v8  ;;  %v757_v8 = vld [vmem:[#allocation2 + $0x7c0] sm:$0xff]  ;;  %1157 = vmatprep.subr.bf16.mxu1 %v1156_v5 }
  0x98   : > { %1117 = vmatprep.subr.bf16.mxu0 %v1116_v9  ;;  %v758_v9 = vld [vmem:[#allocation2 + $0x7d0] sm:$0xff] }
  0x99   : > { %v1160_v11 = vpack.c.bf16 %v758_v9, %v757_v8 }
  0x9a   : > { %1159 = vmatpush3.bf16.msra.mxu1 %v1158_v10 }
  0x9b   : > { %1119 = vmatpush1.bf16.msra.mxu0 %v1118_v14  ;;  %1161 = vmatprep.subr.bf16.mxu1 %v1160_v11 }
  0x9c   : > { %1121 = vmatprep.subr.bf16.mxu0 %v1120_v15 }
  0x9f   : > { %1123 = vmatpush1.bf16.msra.mxu0 %v1122_v20 }
  0xa0   : > { %1125 = vmatprep.subr.bf16.mxu0 %v1124_v21 }
  0xa3   : > { %1127 = vmatpush1.bf16.msra.mxu0 %v1126_v23 }
  0xa4   : > { %1129 = vmatprep.subr.bf16.mxu0 %v1128_v26 }
  0xa7   : > { %1131 = vmatpush1.bf16.msra.mxu0 %v1130_v29  ;;  %v741_v29 = vld [vmem:[#allocation2 + $0x6c0] sm:$0xff] }
  0xa8   : > { %1133 = vmatprep.subr.bf16.mxu0 %v1132_v31  ;;  %v1162_v30 = vpack.c.bf16 %v742_v48, %v741_v29  ;;  %v759_v31 = vld [vmem:[#allocation2 + $0x7e0] sm:$0xff] }
  0xa9   : > { %v1164_v33 = vpack.c.bf16 %v760_v32, %v759_v31 }
  0xaa   : > { %1163 = vmatpush3.bf16.msra.mxu1 %v1162_v30 }
  0xab   : > { %1135 = vmatpush1.bf16.msra.mxu0 %v1134_v34  ;;  %v743_v34 = vld [vmem:[#allocation2 + $0x6e0] sm:$0xff]  ;;  %1165 = vmatprep.subr.bf16.mxu1 %v1164_v33 }
  0xac   : > { %v1166_v36 = vpack.c.bf16 %v744_v35, %v743_v34 }
  0xae   : > { %1167 = vmatpush3.bf16.msra.mxu1 %v1166_v36 }
 0x121   : > { %v253_v12 = vpop.f32.mrb[0].mxu0 }
 0x122   : > { %v356_v13 = vpop.f32.mrb[0].mxu1  ;;  %v255_v14 = vpop.f32.mrb[1].mxu0 }
 0x123   : > { %v567_v15 = vmax.f32 %v253_v12, %v356_v13  ;;  %v358_v16 = vpop.f32.mrb[1].mxu1 }
 0x124   : > { %v568_v17 = vmax.f32 %v255_v14, %v358_v16 }
 0x141   : > { %v459_v18 = vpop.f32.mrb[2].mxu0 }
 0x142   : > { %v562_v19 = vpop.f32.mrb[2].mxu1  ;;  %v461_v20 = vpop.f32.mrb[3].mxu0 }
 0x143   : > { %v569_v21 = vmax.f32 %v459_v18, %v562_v19  ;;  %v564_v22 = vpop.f32.mrb[3].mxu1 }
 0x144   : > { %v570_v0 = vmax.f32 %v461_v20, %v564_v22 }
 0x145   : > { %v571_v23 = vmax.f32 %v567_v15, %v569_v21 }
 0x146   : > { %v572_v24 = vmax.f32 %v568_v17, %v570_v0 }
 0x147   : > { %v575_v25 = vmul.f32 0.01, %v571_v23  ;;  %vm573_vm1 = vcmp.gt.f32.partialorder %v571_v23, 0.0 }
 0x148   : > { %vm574_vm0 = vcmp.gt.f32.partialorder %v572_v24, 0.0  ;;  %v576_v26 = vmul.f32 0.01, %v572_v24 }
 0x149   : > { %v577_v28 = vsel %vm573_vm1, %v571_v23, %v575_v25 }
 0x14a   : > { %v578_v27 = vsel %vm574_vm0, %v572_v24, %v576_v26 }
 0x14b   : > { %720 = vmatprep.mubr.f32.mxu0 %v578_v27 }
 0x14c   : > { %721 = vmatmul.mubr.f32.vlgmr.msra.gmra.mrb[4].mxu0 %v577_v28 }
 0x21f   : > { %v722_v44 = vpop.f32.mrb[4].mxu0 }
 0x220   : > { %v723_v45 = vadd.f32 %v722_v44, %v649_v42  ;;  %v724_v46 = vpop.f32.mrb[5].mxu0 }
 0x221   : > { %v725_v47 = vadd.f32 %v724_v46, %v653_v43 }
 0x222   : > { %v727_v50 = vmax.f32 %v723_v45, 0.0 }
 0x223   : > { %v728_v49 = vmax.f32 %v725_v47, 0.0 }
 0x225   : > { %826 = vmatprep.mubr.f32.mxu1 %v728_v49 }
 0x226   : > { %827 = vmatmul.mubr.f32.vlgmr.msra.gmra.mrb[4].mxu1 %v727_v50 }
 0x2f9   : > { %v941_v51 = vpop.f32.mrb[4].mxu1 }
 0x2fa   : > { %v942_v53 = vpop.f32.mrb[5].mxu1 }
 0x2fb   : > { %v943_v54 = vadd.f32 %v942_v53, %v941_v51 }
 0x2fd   : > { %v829_v55 = vadd.f32 %v943_v54, %v761_v52 }
 0x2ff   : > { %832 = vst [vmem:[%s153_s5] sm:$0xff] %v829_v55 }
 0x300 PF: > { %s13_s9 = sadd.s32 1, %s1228_s9  }
 0x301   : > { %p10_p3 = scmp.ge.s32.totalorder %s13_s9, 4  }
 0x303   :  { %12 = sbr.rel (!%p10_p3) target bundleno = 1 (0x1), region = 64 }
 0x30a   :  { %852 = vsyncpa [#allocation3], 1 }
 0x30b   :  { %854 = vsyncpa [#allocation3 + $0x1], 1 }

</bundles_post_ra>
